<compile_context>
chip_gen: v7x
topology: tpu7x:2x2x1
jax: 0.10.0
libtpu: 0.0.40
codegen_flags: <defaults>
</compile_context>

<pallas_src>
import functools

import jax
import jax.numpy as jnp
from jax.experimental import pallas as pl
from jax.experimental.pallas import tpu as pltpu


def _round_up(x, m):
    return ((x + m - 1) // m) * m


def _vanilla_loss_kernel(tb_ref, rm_ref, lg_ref, out_ref, *, total_rows, rows_block):
    """One grid step: a (rows_block, D) tile -> one partial sum of logll."""
    truth = tb_ref[...].astype(jnp.float32)     # (rows, D)
    masks = rm_ref[...].astype(jnp.float32)     # (rows, D)
    logits = lg_ref[...].astype(jnp.float32)    # (rows, D)

    # exp_pred = exp(min(raw_logits, 10)) * rule_masks + 1e-30
    e = jnp.exp(jnp.minimum(logits, 10.0)) * masks + 1e-30

    # masked softmax folded into two lane-reductions (prob never materialized):
    #   ll = sum(truth * exp_pred, -1) / sum(exp_pred, -1)
    norm = jnp.sum(e, axis=-1, keepdims=True)              # (rows, 1)
    num = jnp.sum(truth * e, axis=-1, keepdims=True)       # (rows, 1)
    ll = num / norm                                        # (rows, 1), >= 0

    # mask = 1 - rule_masks[:, -1]
    d = masks.shape[-1]
    gate = 1.0 - masks[:, d - 1:d]                         # (rows, 1)

    logll = gate * jnp.log(jnp.maximum(ll, 1e-30))         # (rows, 1)

    # Boundary block: zero out rows past the end of the real array (their input
    # data is unspecified padding).  Only emitted when the grid is ragged.
    if total_rows % rows_block != 0:
        i = pl.program_id(0)
        row_ids = jax.lax.broadcasted_iota(jnp.int32, logll.shape, 0)
        valid = row_ids < (total_rows - i * rows_block)
        logll = jnp.where(valid, logll, 0.0)

    # per-block partial sum (independent block per grid step -> "parallel")
    out_ref[...] = jnp.zeros_like(out_ref) + jnp.sum(logll)


def perp_calculator_vanilla(true_binary, rule_masks, raw_logits, *, rows_block=4096):
    """Pallas implementation of PerpCalculator.forward for loss_type='vanilla'."""
    T, B, D = true_binary.shape
    assert rule_masks.shape == (T, B, D) and raw_logits.shape == (T, B, D)

    R = T * B
    tb = true_binary.reshape(R, D)   # contiguous reshape: no HBM copy
    rm = rule_masks.reshape(R, D)
    lg = raw_logits.reshape(R, D)

    # Sublane-aligned row tile, clamped to the (8-rounded) problem size.
    rows_block = max(8, min(int(rows_block), _round_up(R, 8)))
    rows_block = _round_up(rows_block, 8)
    num_blocks = pl.cdiv(R, rows_block)

    kernel = functools.partial(
        _vanilla_loss_kernel, total_rows=R, rows_block=rows_block)

    in_spec = pl.BlockSpec((rows_block, D), lambda i: (i, 0))
    out_spec = pl.BlockSpec((1, 1, 1), lambda i: (i, 0, 0))

    partials = pl.pallas_call(
        kernel,
        out_shape=jax.ShapeDtypeStruct((num_blocks, 1, 1), jnp.float32),
        grid_spec=pltpu.PrefetchScalarGridSpec(
            num_scalar_prefetch=0,
            grid=(num_blocks,),
            in_specs=[in_spec, in_spec, in_spec],
            out_specs=out_spec,
        ),
        compiler_params=pltpu.CompilerParams(
            # independent per-block partials -> megacore sharding on v7x
            dimension_semantics=("parallel",),
        ),
    )(tb, rm, lg)

    # loss = -sum(logll) / time_steps
    return -jnp.sum(partials) / jnp.float32(T)


def _reference_vanilla(true_binary, rule_masks, raw_logits):
    """Pure-JAX reference mirroring the PyTorch 'vanilla' branch."""
    tb = true_binary.astype(jnp.float32)
    rm = rule_masks.astype(jnp.float32)
    lg = raw_logits.astype(jnp.float32)
    exp_pred = jnp.exp(jnp.clip(lg, -1e30, 10.0)) * rm + 1e-30
    norm = jnp.sum(exp_pred, axis=2, keepdims=True)
    prob = exp_pred / norm
    ll = jnp.abs(jnp.sum(tb * prob, axis=2))
    mask = 1.0 - rm[:, :, -1]
    logll = mask * jnp.log(jnp.clip(ll, 1e-30, 1e30))
    return -jnp.sum(logll) / tb.shape[0]


# TODO(synk): loss_type == 'perplexity' dispatches to my_perp_loss (custom C/CUDA
# extension with no visible math) and loss_type == 'binary' needs external
# cmd_args.max_decode_steps; neither is implemented here.

def _make_inputs(key, T, B, D):
    k1, k2, k3 = jax.random.split(key, 3)
    raw_logits = jax.random.normal(k1, (T, B, D), dtype=jnp.float32)
    rule_masks = jax.random.bernoulli(k2, 0.5, (T, B, D)).astype(jnp.float32)
    choice = jax.random.randint(k3, (T, B), 0, D)
    true_binary = jax.nn.one_hot(choice, D, dtype=jnp.float32)
    return true_binary, rule_masks, raw_logits


if __name__ == "__main__":
    key = jax.random.PRNGKey(0)

    # Case 1: small shapes consistent with the module (time_steps x bsize x DECISION_DIM).
    T, B, D = 8, 4, 80  # DECISION_DIM = 80 in sd_vae
    k1, k2 = jax.random.split(key)
    tb, rm, lg = _make_inputs(k1, T, B, D)

    loss = jax.block_until_ready(perp_calculator_vanilla(tb, rm, lg))
    ref = jax.block_until_ready(_reference_vanilla(tb, rm, lg))
    assert jnp.allclose(loss, ref, rtol=1e-5, atol=1e-5), (loss, ref)

    # Case 2: small row tile to force a multi-block "parallel" grid of partials.
    loss_mb = jax.block_until_ready(
        perp_calculator_vanilla(tb, rm, lg, rows_block=8))
    assert jnp.allclose(loss_mb, ref, rtol=1e-5, atol=1e-5), (loss_mb, ref)

    # Case 3: ragged T*B (single boundary block, in-kernel row mask active).
    T2, B2 = 5, 3
    tb2, rm2, lg2 = _make_inputs(k2, T2, B2, D)
    loss2 = jax.block_until_ready(perp_calculator_vanilla(tb2, rm2, lg2))
    ref2 = jax.block_until_ready(_reference_vanilla(tb2, rm2, lg2))
    assert jnp.allclose(loss2, ref2, rtol=1e-5, atol=1e-5), (loss2, ref2)

    # Case 4: ragged T*B with a multi-block grid (full blocks + one masked boundary block).
    loss2_mb = jax.block_until_ready(
        perp_calculator_vanilla(tb2, rm2, lg2, rows_block=8))
    assert jnp.allclose(loss2_mb, ref2, rtol=1e-5, atol=1e-5), (loss2_mb, ref2)

    print("KERNEL_OK")
</pallas_src>

<mosaic_0001>
module attributes {stable_mosaic.version = 11 : i64} {
  func.func @_vanilla_loss_kernel(%arg0: i32, %arg1: memref<32x80xf32, #tpu.memory_space<vmem>>, %arg2: memref<32x80xf32, #tpu.memory_space<vmem>>, %arg3: memref<32x80xf32, #tpu.memory_space<vmem>>, %arg4: memref<1x1x1xf32, #tpu.memory_space<vmem>>) attributes {dimension_semantics = [#tpu.dimension_semantics<parallel>], iteration_bounds = array<i64: 1>, scalar_prefetch = 0 : i64, scratch_operands = 0 : i64, tpu.core_type = #tpu.core_type<tc>, window_params = [{transform_indices = @transform_0, window_bounds = array<i64: 32, 80>}, {transform_indices = @transform_1, window_bounds = array<i64: 32, 80>}, {transform_indices = @transform_2, window_bounds = array<i64: 32, 80>}, {transform_indices = @transform_3, window_bounds = array<i64: 1, 1, 1>}]} {
    %c0 = arith.constant 0 : index
    %c0_0 = arith.constant 0 : index
    %0 = vector.load %arg1[%c0, %c0_0] : memref<32x80xf32, #tpu.memory_space<vmem>>, vector<32x80xf32>
    %c0_1 = arith.constant 0 : index
    %c0_2 = arith.constant 0 : index
    %1 = vector.load %arg2[%c0_1, %c0_2] : memref<32x80xf32, #tpu.memory_space<vmem>>, vector<32x80xf32>
    %c0_3 = arith.constant 0 : index
    %c0_4 = arith.constant 0 : index
    %2 = vector.load %arg3[%c0_3, %c0_4] : memref<32x80xf32, #tpu.memory_space<vmem>>, vector<32x80xf32>
    %cst = arith.constant 1.000000e+01 : f32
    %3 = vector.broadcast %cst : f32 to vector<32x80xf32>
    %4 = arith.minimumf %2, %3 : vector<32x80xf32>
    %5 = math.exp %4 : vector<32x80xf32>
    %6 = arith.mulf %5, %1 : vector<32x80xf32>
    %cst_5 = arith.constant 1.000000e-30 : f32
    %7 = vector.broadcast %cst_5 : f32 to vector<32x80xf32>
    %8 = arith.addf %6, %7 : vector<32x80xf32>
    %cst_6 = arith.constant dense<0.000000e+00> : vector<32xf32>
    %9 = vector.multi_reduction <add>, %8, %cst_6 [1] : vector<32x80xf32> to vector<32xf32>
    %10 = vector.shape_cast %9 : vector<32xf32> to vector<32x1xf32>
    %11 = arith.mulf %0, %8 : vector<32x80xf32>
    %cst_7 = arith.constant dense<0.000000e+00> : vector<32xf32>
    %12 = vector.multi_reduction <add>, %11, %cst_7 [1] : vector<32x80xf32> to vector<32xf32>
    %13 = vector.shape_cast %12 : vector<32xf32> to vector<32x1xf32>
    %14 = arith.divf %13, %10 : vector<32x1xf32>
    %15 = vector.extract_strided_slice %1 {offsets = [0, 79], sizes = [32, 1], strides = [1, 1]} : vector<32x80xf32> to vector<32x1xf32>
    %cst_8 = arith.constant 1.000000e+00 : f32
    %16 = vector.broadcast %cst_8 : f32 to vector<32x1xf32>
    %17 = arith.subf %16, %15 : vector<32x1xf32>
    %cst_9 = arith.constant 1.000000e-30 : f32
    %18 = vector.broadcast %cst_9 : f32 to vector<32x1xf32>
    %19 = arith.maximumf %14, %18 : vector<32x1xf32>
    %20 = math.log %19 : vector<32x1xf32>
    %21 = arith.mulf %17, %20 : vector<32x1xf32>
    %cst_10 = arith.constant 0.000000e+00 : f32
    %22 = vector.broadcast %cst_10 : f32 to vector<1x1x1xf32>
    %23 = vector.shape_cast %21 : vector<32x1xf32> to vector<1x32x1xf32>
    %cst_11 = arith.constant dense<0.000000e+00> : vector<1xf32>
    %24 = vector.multi_reduction <add>, %23, %cst_11 [1, 2] : vector<1x32x1xf32> to vector<1xf32>
    %25 = vector.shape_cast %24 : vector<1xf32> to vector<1x1x1xf32>
    %26 = vector.extract %25[0, 0, 0] : f32 from vector<1x1x1xf32>
    %27 = vector.broadcast %26 : f32 to vector<1x1x1xf32>
    %28 = arith.addf %22, %27 : vector<1x1x1xf32>
    %c0_12 = arith.constant 0 : index
    %c0_13 = arith.constant 0 : index
    %c0_14 = arith.constant 0 : index
    %29 = vector.load %arg4[%c0_12, %c0_13, %c0_14] : memref<1x1x1xf32, #tpu.memory_space<vmem>>, vector<1x1x1xf32>
    tpu.vector_store %arg4[%c0_12, %c0_13, %c0_14], %28 {strides = array<i32>} : memref<1x1x1xf32, #tpu.memory_space<vmem>>, vector<1x1x1xf32>,
    return
  }
  func.func @transform_0(%arg0: i32) -> (i32, i32) {
    %c0_i32 = arith.constant 0 : i32
    %c0_i32_0 = arith.constant 0 : i32
    return %arg0, %c0_i32 : i32, i32
  }
  func.func @transform_1(%arg0: i32) -> (i32, i32) {
    %c0_i32 = arith.constant 0 : i32
    %c0_i32_0 = arith.constant 0 : i32
    return %arg0, %c0_i32 : i32, i32
  }
  func.func @transform_2(%arg0: i32) -> (i32, i32) {
    %c0_i32 = arith.constant 0 : i32
    %c0_i32_0 = arith.constant 0 : i32
    return %arg0, %c0_i32 : i32, i32
  }
  func.func @transform_3(%arg0: i32) -> (i32, i32, i32) {
    %c0_i32 = arith.constant 0 : i32
    %c0_i32_0 = arith.constant 0 : i32
    %c0_i32_1 = arith.constant 0 : i32
    return %arg0, %c0_i32, %c0_i32_0 : i32, i32, i32
  }
}

</mosaic_0001>

<bundles_post_ra>
// kernel: tpu_custom_call.1
= control target key start
LH: loop header
LB: loop body
LE: loop exit
PB: predicated region body
PF: predicated region fallthrough
CT: control target
= control target key end

     0   :  { %8 = vsyncpa [#allocation3], 0  ;;  %s440_s0 = inlined_call_operand.hbm [shape: f32[32,80], index: 0, kind: input, shape index: {}]   ;;  %s441_s1 = inlined_call_operand.hbm [shape: f32[32,80], index: 1, kind: input, shape index: {}]   ;;  %s442_s2 = inlined_call_operand.hbm [shape: f32[32,80], index: 2, kind: input, shape index: {}]   ;;  %s443_s3 = inlined_call_operand.hbm [shape: f32[1,1,1], index: 3, kind: output, shape index: {}]  }
   0x1   :  { %9 = vsyncpa [#allocation6], 0 }
   0x2   :  { %10 = vsyncpa [#allocation4], 0  ;;  %s325_s12 = smov [#allocation5]   ;;  %s326_s14 = smov [#allocation2]  }
   0x3   :  { %s28_s13 = sshll.u32 %s325_s12, 4  ;;  %s16_s15 = sshll.u32 %s326_s14, 4  ;;  %s29_s13 = int_to_ptr.vmem [resolvable:$true] %s28_s13  ;;  %s352_s15 = int_to_ptr.vmem [resolvable:$true] %s16_s15 }
   0x4   :  { %s231_s18 = scalar_lea.hbm %s441_s1, 512 }
   0x5   :  { %p232_p0 = scmp.ne.s32.totalorder %s441_s1, %s231_s18  ;;  %p235_p1 = scmp.lt.u32.totalorder %s231_s18, %s441_s1 }
   0x7   :  { %p237_p2 = pnand %p235_p1, %p232_p0 }
   0x9   :  { %240 = shalt.err (!%p237_p2)
}
   0xa   :  { %s241_s23 = scalar_lea.vmem %s29_s13, 512  ;;  %p246_p4 = scmp.lt.s32.totalorder %s29_s13, %s29_s13 }
   0xb   :  { %p242_p3 = scmp.ne.s32.totalorder %s29_s13, %s241_s23  ;;  %p247_p5 = scmp.lt.s32.totalorder %s241_s23, %s241_s23 }
   0xd   :  { %p248_p6 = por %p247_p5, %p246_p4 }
   0xf   :  { %p249_p7 = pnand %p248_p6, %p242_p3 }
  0x11   :  { %252 = shalt.err (!%p249_p7)
}
  0x12   :  { %s327_s24 = smov 128   ;;  %s328_s25 = smov 8  }
  0x13   :  { %34 = dma.hbm_to_vmem [thread:$0]  %s441_s1, 512, %s29_s13, [#allocation6], %s327_s24, %s327_s24, %s328_s25  }
  0x14   :  { %s253_s30 = scalar_lea.hbm %s440_s0, 512 }
  0x15   :  { %p254_p8 = scmp.ne.s32.totalorder %s440_s0, %s253_s30  ;;  %p257_p9 = scmp.lt.u32.totalorder %s253_s30, %s440_s0 }
  0x17   :  { %p259_p10 = pnand %p257_p9, %p254_p8 }
  0x19   :  { %262 = shalt.err (!%p259_p10)
}
  0x1a   :  { %s263_s8 = scalar_lea.vmem %s352_s15, 512  ;;  %p268_p12 = scmp.lt.s32.totalorder %s352_s15, %s352_s15 }
  0x1b   :  { %p264_p11 = scmp.ne.s32.totalorder %s352_s15, %s263_s8  ;;  %p269_p13 = scmp.lt.s32.totalorder %s263_s8, %s263_s8 }
  0x1d   :  { %p270_p0 = por %p269_p13, %p268_p12 }
  0x1f   :  { %p271_p1 = pnand %p270_p0, %p264_p11 }
  0x21   :  { %274 = shalt.err (!%p271_p1)
}
  0x22   :  { %22 = dma.hbm_to_vmem [thread:$0]  %s440_s0, 512, %s352_s15, [#allocation3], %s327_s24, %s327_s24, %s328_s25  }
  0x23   :  { %s329_s10 = smov [#allocation7]   ;;  %s275_s14 = scalar_lea.hbm %s442_s2, 512 }
  0x24   :  { %s40_s11 = sshll.u32 %s329_s10, 4  ;;  %p276_p2 = scmp.ne.s32.totalorder %s442_s2, %s275_s14  ;;  %s41_s11 = int_to_ptr.vmem [resolvable:$true] %s40_s11 }
  0x25   :  { %p279_p3 = scmp.lt.u32.totalorder %s275_s14, %s442_s2 }
  0x27   :  { %p281_p4 = pnand %p279_p3, %p276_p2 }
  0x29   :  { %284 = shalt.err (!%p281_p4)
}
  0x2a   :  { %s285_s20 = scalar_lea.vmem %s41_s11, 512  ;;  %p290_p6 = scmp.lt.s32.totalorder %s41_s11, %s41_s11 }
  0x2b   :  { %p286_p5 = scmp.ne.s32.totalorder %s41_s11, %s285_s20  ;;  %p291_p7 = scmp.lt.s32.totalorder %s285_s20, %s285_s20 }
  0x2d   :  { %p292_p8 = por %p291_p7, %p290_p6 }
  0x2f   :  { %p293_p9 = pnand %p292_p8, %p286_p5 }
  0x31   :  { %296 = shalt.err (!%p293_p9)
}
  0x32   :  { %46 = dma.hbm_to_vmem [thread:$0]  %s442_s2, 512, %s41_s11, [#allocation6], %s327_s24, %s327_s24, %s328_s25  }
  0x33   :  { %319 = dma.done.wait [#allocation3], 512  }
  0x34   :  { %320 = vsyncadd [#allocation3], 4294966784 }
  0x35   :  { %321 = dma.done.wait [#allocation6], 1024  }
  0x36   :  { %322 = vsyncadd [#allocation6], 4294966272  ;;  %v64_v0 = vld [vmem:[#allocation7] sm:$0xff]  ;;  %v65_v2 = vld [vmem:[#allocation7 + $0x8] sm:$0xff]  ;;  %vm88_vm0 = vcmask 654336   ;;  %s330_s2 = smov 49  }
  0x37   :  { %v68_v1 = vmin.f32 %v64_v0, 10.0  ;;  %v66_v3 = vld [vmem:[#allocation7 + $0x10] sm:$0xff]  ;;  %v69_v4 = vmin.f32 %v65_v2, 10.0  ;;  %v67_v6 = vld [vmem:[#allocation7 + $0x18] sm:$0xff]  ;;  %v404_v12 = vld [vmem:[#allocation5] sm:$0xff]  ;;  %vm161_vm1 = vcmask 7168  }
  0x38   :  { %v70_v5 = vmin.f32 %v66_v3, 10.0  ;;  %v71_v8 = vmin.f32 %v67_v6, 10.0  ;;  %v406_v13 = vld [vmem:[#allocation5 + $0x8] sm:$0xff]  ;;  %v408_v15 = vld [vmem:[#allocation5 + $0x10] sm:$0xff]  ;;  %v411_v18 = vld [vmem:[#allocation5 + $0x18] sm:$0xff]  ;;  %v125_v0 = vsub.f32 1.0, %v404_v12 }
  0x39   :  { %v72_v7 = vmul.f32 1.442695, %v68_v1  ;;  %v74_v9 = vmul.f32 1.442695, %v69_v4  ;;  %v56_v26 = vld [vmem:[#allocation2] sm:$0xff]  ;;  %v57_v30 = vld [vmem:[#allocation2 + $0x8] sm:$0xff] }
  0x3a   :  { %v76_v10 = vmul.f32 1.442695, %v70_v5  ;;  %v78_v11 = vmul.f32 1.442695, %v71_v8  ;;  %v58_v34 = vld [vmem:[#allocation2 + $0x10] sm:$0xff]  ;;  %v59_v37 = vld [vmem:[#allocation2 + $0x18] sm:$0xff] }
  0x3b   :  { %207 = vpow2.f32 %v72_v7  ;;  %v126_v4 = vsub.f32 1.0, %v406_v13  ;;  %v127_v7 = vsub.f32 1.0, %v408_v15  ;;  %s331_s21 = smov [#allocation8]   ;;  %vm180_vm2 = vcmask 0  }
  0x3c   :  { %209 = vpow2.f32 %v74_v9  ;;  %s188_s22 = sshll.u32 %s331_s21, 4  ;;  %s189_s22 = int_to_ptr.vmem [resolvable:$true] %s188_s22 }
  0x3d   :  { %211 = vpow2.f32 %v76_v10  ;;  %s297_s24 = scalar_lea.vmem %s189_s22, 16  ;;  %s301_s25 = scalar_lea.vmem %s189_s22, 32 }
  0x3e   :  { %213 = vpow2.f32 %v78_v11  ;;  %p298_p10 = scmp.ne.s32.totalorder %s189_s22, %s297_s24  ;;  %p302_p11 = scmp.lt.s32.totalorder %s189_s22, %s189_s22 }
  0x3f   :  { %p303_p12 = scmp.lt.s32.totalorder %s301_s25, %s297_s24 }
  0x41   :  { %p304_p13 = por %p303_p12, %p302_p11 }
  0x43   :  { %p305_p0 = pnand %p304_p13, %p298_p10 }
  0x45   :  { %v208_v14 = vpop.eup %207 }
  0x46   :  { %v210_v16 = vpop.eup %209  ;;  %v80_v17 = vmul.f32 %v208_v14, %v404_v12  ;;  %v128_v14 = vsub.f32 1.0, %v411_v18 }
  0x47   :  { %v212_v19 = vpop.eup %211  ;;  %v81_v20 = vmul.f32 %v210_v16, %v406_v13 }
  0x48   :  { %v214_v21 = vpop.eup %213  ;;  %v84_v22 = vadd.f32 1e-30, %v80_v17  ;;  %v82_v23 = vmul.f32 %v212_v19, %v408_v15 }
  0x49   :  { %v85_v24 = vadd.f32 1e-30, %v81_v20  ;;  %v83_v25 = vmul.f32 %v214_v21, %v411_v18 }
  0x4a   :  { %v89_v27 = vsel %vm88_vm0, %v84_v22, 0.0  ;;  %v86_v28 = vadd.f32 1e-30, %v82_v23  ;;  %v101_v33 = vmul.f32 %v84_v22, %v56_v26 }
  0x4b   :  { %90 = vadd.xlane.f32.xlu0 %v89_v27  ;;  %v87_v29 = vadd.f32 1e-30, %v83_v25  ;;  %v92_v31 = vsel %vm88_vm0, %v85_v24, 0.0  ;;  %v102_v36 = vmul.f32 %v85_v24, %v57_v30 }
  0x4c   :  { %v95_v32 = vsel %vm88_vm0, %v86_v28, 0.0  ;;  %v105_v38 = vsel %vm88_vm0, %v101_v33, 0.0  ;;  %v103_v39 = vmul.f32 %v86_v28, %v58_v34 }
  0x4d   :  { %96 = vadd.xlane.f32.xlu1 %v95_v32  ;;  %v98_v35 = vsel %vm88_vm0, %v87_v29, 0.0  ;;  %v108_v40 = vsel %vm88_vm0, %v102_v36, 0.0  ;;  %v104_v41 = vmul.f32 %v87_v29, %v59_v37 }
  0x4e   :  { %v111_v42 = vsel %vm88_vm0, %v103_v39, 0.0 }
  0x4f   :  { %93 = vadd.xlane.f32.xlu0 %v92_v31  ;;  %v114_v43 = vsel %vm88_vm0, %v104_v41, 0.0 }
  0x51   :  { %99 = vadd.xlane.f32.xlu1 %v98_v35 }
  0x53   :  { %106 = vadd.xlane.f32.xlu0 %v105_v38 }
  0x55   :  { %109 = vadd.xlane.f32.xlu1 %v108_v40 }
  0x57   :  { %112 = vadd.xlane.f32.xlu0 %v111_v42 }
  0x59   :  { %115 = vadd.xlane.f32.xlu1 %v114_v43 }
  0xd8   :  { %v91_v44 = vpop.xlane.xlu0 %90 }
  0xd9   :  { %215 = vrcp.f32 %v91_v44 }
  0xda   :  { %v97_v45 = vpop.xlane.xlu1 %96 }
  0xdb   :  { %217 = vrcp.f32 %v97_v45 }
  0xdc   :  { %v94_v46 = vpop.xlane.xlu0 %93 }
  0xdd   :  { %219 = vrcp.f32 %v94_v46 }
  0xde   :  { %v100_v47 = vpop.xlane.xlu1 %99 }
  0xdf   :  { %221 = vrcp.f32 %v100_v47 }
  0xe0   :  { %v107_v48 = vpop.xlane.xlu0 %106 }
  0xe2   :  { %v110_v50 = vpop.xlane.xlu1 %109 }
  0xe3   :  { %v216_v49 = vpop.eup %215 }
  0xe4   :  { %v118_v51 = vmul.f32 %v216_v49, %v107_v48  ;;  %v113_v52 = vpop.xlane.xlu0 %112 }
  0xe5   :  { %v218_v53 = vpop.eup %217 }
  0xe6   :  { %v129_v54 = vmax.f32 %v118_v51, 1e-30  ;;  %v122_v55 = vmul.f32 %v218_v53, %v113_v52  ;;  %v116_v57 = vpop.xlane.xlu1 %115 }
  0xe7   :  { %v220_v56 = vpop.eup %219 }
  0xe8   :  { %223 = vlog2.f32 %v129_v54  ;;  %v120_v58 = vmul.f32 %v220_v56, %v110_v50  ;;  %v131_v59 = vmax.f32 %v122_v55, 1e-30 }
  0xe9   :  { %v222_v60 = vpop.eup %221 }
  0xea   :  { %v130_v61 = vmax.f32 %v120_v58, 1e-30  ;;  %225 = vlog2.f32 %v131_v59  ;;  %v124_v62 = vmul.f32 %v222_v60, %v116_v57 }
  0xec   :  { %227 = vlog2.f32 %v130_v61  ;;  %v132_v63 = vmax.f32 %v124_v62, 1e-30 }
  0xee   :  { %229 = vlog2.f32 %v132_v63 }
  0xf2   :  { %v224_v1 = vpop.eup %223 }
  0xf3   :  { %v134_v2 = vmul.f32 0.6931472, %v224_v1 }
  0xf4   :  { %v226_v3 = vpop.eup %225 }
  0xf5   :  { %v141_v5 = vmul.f32 %v134_v2, %v125_v0  ;;  %v138_v9 = vmul.f32 0.6931472, %v226_v3 }
  0xf6   :  { %v228_v6 = vpop.eup %227 }
  0xf7   :  { %v136_v8 = vmul.f32 0.6931472, %v228_v6  ;;  %149 = vrot.lane.b32.xlu0 %v141_v5, %s330_s2  ;;  %v143_v12 = vmul.f32 %v138_v9, %v127_v7 }
  0xf8   :  { %v230_v10 = vpop.eup %229 }
  0xf9   :  { %v142_v11 = vmul.f32 %v136_v8, %v126_v4  ;;  %v140_v16 = vmul.f32 0.6931472, %v230_v10 }
  0xfb   :  { %151 = vrot.lane.b32.xlu1 %v142_v11, %s330_s2  ;;  %v144_v17 = vmul.f32 %v140_v16, %v128_v14 }
  0xff   :  { %153 = vrot.lane.b32.xlu1 %v143_v12, %s330_s2 }
 0x103   :  { %155 = vrot.lane.b32.xlu1 %v144_v17, %s330_s2 }
 0x169   :  { %v150_v13 = vpop.permute.xlu0 %149 }
 0x16a   :  { %v162_v15 = vsel %vm161_vm1, %v150_v13, 0.0 }
 0x16d   :  { %v152_v19 = vpop.permute.xlu1 %151 }
 0x16e   :  { %v163_v20 = vsel %vm161_vm1, %v152_v19, 0.0 }
 0x16f   :  { %v164_v23 = vadd.f32 %v163_v20, %v162_v15 }
 0x171   :  { %v154_v21 = vpop.permute.xlu1 %153 }
 0x172   :  { %v165_v22 = vsel %vm161_vm1, %v154_v21, 0.0 }
 0x173   :  { %v166_v24 = vadd.f32 %v165_v22, %v164_v23 }
 0x175   :  { %v156_v25 = vpop.permute.xlu1 %155 }
 0x176   :  { %v167_v26 = vsel %vm161_vm1, %v156_v25, 0.0 }
 0x177   :  { %v168_v27 = vadd.f32 %v167_v26, %v166_v24 }
 0x179   :  { %169 = vadd.xlane.f32.xlu0 %v168_v27 }
 0x206   :  { %v170_v18 = vpop.xlane.xlu0 %169 }
 0x207   :  { %v171_v28 = vrot.slane %v170_v18, 4 }
 0x209   :  { %v172_v29 = vadd.f32 %v171_v28, %v170_v18 }
 0x20b   :  { %v173_v30 = vrot.slane %v172_v29, 2 }
 0x20d   :  { %v174_v31 = vadd.f32 %v173_v30, %v172_v29 }
 0x20f   :  { %v175_v32 = vrot.slane %v174_v31, 1 }
 0x211   :  { %v176_v33 = vadd.f32 %v175_v32, %v174_v31 }
 0x213   :  { %198 = vpush %v176_v33 }
 0x244   :  { %s199_s23 = spop %198 }
 0x245   :  { %v178_v34 = vstv %s199_s23 }
 0x246   :  { %181 = vst.msk [vmem:[#allocation8] sm:$0x1] %vm180_vm2, %v178_v34 }
 0x247   :  { %308 = shalt.err (!%p305_p0)
}
 0x248   :  { %s309_s28 = scalar_lea.hbm %s443_s3, 16 }
 0x249   :  { %p310_p1 = scmp.ne.s32.totalorder %s443_s3, %s309_s28  ;;  %p313_p2 = scmp.lt.u32.totalorder %s309_s28, %s443_s3 }
 0x24b   :  { %p315_p3 = pnand %p313_p2, %p310_p1 }
 0x24d   :  { %318 = shalt.err (!%p315_p3)
}
 0x24e   :  { %191 = dma.vmem_to_hbm [thread:$0]  %s189_s22, 16, %s443_s3, [#allocation4]  }
 0x24f   :  { %323 = dma.done.wait [#allocation4], 16  }
 0x250   :  { %324 = vsyncadd [#allocation4], 4294967280 }
 0x251   :  { %195 = vsyncpa [#allocation3], 1 }
 0x252   :  { %196 = vsyncpa [#allocation6], 1 }
 0x253   :  { %197 = vsyncpa [#allocation4], 1 }

</bundles_post_ra>
